<compile_context>
chip_gen: v5e
topology: v5e:2x2
jax: 0.10.0
libtpu: 0.0.40
codegen_flags: <defaults>
</compile_context>

<pallas_src>
import functools

import jax
import jax.numpy as jnp
from jax.experimental import pallas as pl
from jax.experimental.pallas import tpu as pltpu

_LANE = 128


def _round_up(n: int, m: int) -> int:
    return ((n + m - 1) // m) * m


def _pad2(a, rows: int, cols: int):
    return jnp.pad(a, ((0, rows - a.shape[0]), (0, cols - a.shape[1])))


def _vnb_kernel(
    x_ref, eps_ref,
    wfc_ref, bfc_ref,
    wh_ref, bh_ref,      # fused [W_mu | W_lv], [b_mu | b_lv]
    ws_ref, bs_ref,
    packed_ref,          # (tile_b, 3*latent_p) = [out | mu | log_var]
):
    lat_p = ws_ref.shape[0]
    mm_dtype = wfc_ref.dtype  # bf16 or f32 MXU inputs; accumulation is always f32

    x = x_ref[...]

    # hidden = x @ W_fc + b_fc
    h = jnp.dot(x.astype(mm_dtype), wfc_ref[...],
                preferred_element_type=jnp.float32) + bfc_ref[...]

    # fused heads: [mu | log_var] = h @ [W_mu | W_lv] + [b_mu | b_lv]
    mulv = jnp.dot(h.astype(mm_dtype), wh_ref[...],
                   preferred_element_type=jnp.float32) + bh_ref[...]
    mu = mulv[:, :lat_p]
    lv = mulv[:, lat_p:]

    # re-parametrize: z = eps * exp(0.5 * log_var) + mu
    z = eps_ref[...] * jnp.exp(0.5 * lv) + mu

    # sampler_fc(z)
    out = jnp.dot(z.astype(mm_dtype), ws_ref[...],
                  preferred_element_type=jnp.float32) + bs_ref[...]

    # single lane-dense store (3 * 128-lane-aligned chunks)
    packed_ref[...] = jnp.concatenate([out, mu, lv], axis=-1).astype(packed_ref.dtype)


@functools.partial(jax.jit, static_argnames=("tile_b", "use_bf16_matmul"))
def variational_neural_block(x, eps, params, *, tile_b=256, use_bf16_matmul=False):
    """Fused VariationalNeuralBlock forward.

    x:   (B, input_size) float32
    eps: (B, latent_size) float32 standard-normal noise
    params: dict of weights (in, out) and biases (1, out)
    Returns (sampler_out, mu, log_var), each (B, latent_size) float32.
    """
    B, input_size = x.shape
    hidden_dim = params["w_fc"].shape[1]
    latent_size = params["w_mu"].shape[1]

    # Lane-pad every feature dim to a multiple of 128 (full vreg width).
    in_p = _round_up(input_size, _LANE)
    hid_p = _round_up(hidden_dim, _LANE)
    lat_p = _round_up(latent_size, _LANE)

    # Batch tile: multiple of 8 (f32 sublane), capped by the padded batch.
    tb = min(tile_b, _round_up(B, 8))
    tb = _round_up(tb, 8)
    B_p = _round_up(B, tb)

    f32 = jnp.float32
    w_dtype = jnp.bfloat16 if use_bf16_matmul else f32

    x_p = _pad2(x.astype(f32), B_p, in_p)
    eps_p = _pad2(eps.astype(f32), B_p, lat_p)

    # Zero-padding is exact: padded hidden cols get 0*W + 0 bias, padded latent cols
    # give mu=lv=0 -> z_pad = eps_pad*1 + 0 = 0, which multiplies zero rows of W_s.
    w_fc = _pad2(params["w_fc"], in_p, hid_p).astype(w_dtype)
    b_fc = _pad2(params["b_fc"], 1, hid_p).astype(f32)
    w_heads = jnp.concatenate(
        [_pad2(params["w_mu"], hid_p, lat_p), _pad2(params["w_lv"], hid_p, lat_p)],
        axis=1,
    ).astype(w_dtype)
    b_heads = jnp.concatenate(
        [_pad2(params["b_mu"], 1, lat_p), _pad2(params["b_lv"], 1, lat_p)], axis=1
    ).astype(f32)
    w_s = _pad2(params["w_s"], lat_p, lat_p).astype(w_dtype)
    b_s = _pad2(params["b_s"], 1, lat_p).astype(f32)

    grid = (B_p // tb,)

    def row_map(i):
        return (i, 0)

    def full_map(i):
        return (0, 0)

    in_specs = [
        pl.BlockSpec((tb, in_p), row_map),           # x
        pl.BlockSpec((tb, lat_p), row_map),          # eps
        pl.BlockSpec((in_p, hid_p), full_map),       # W_fc (resident)
        pl.BlockSpec((1, hid_p), full_map),          # b_fc
        pl.BlockSpec((hid_p, 2 * lat_p), full_map),  # [W_mu | W_lv]
        pl.BlockSpec((1, 2 * lat_p), full_map),      # [b_mu | b_lv]
        pl.BlockSpec((lat_p, lat_p), full_map),      # W_s
        pl.BlockSpec((1, lat_p), full_map),          # b_s
    ]
    out_spec = pl.BlockSpec((tb, 3 * lat_p), row_map)

    packed = pl.pallas_call(
        _vnb_kernel,
        out_shape=jax.ShapeDtypeStruct((B_p, 3 * lat_p), f32),
        grid_spec=pltpu.PrefetchScalarGridSpec(
            num_scalar_prefetch=0,
            grid=grid,
            in_specs=in_specs,
            out_specs=out_spec,
        ),
        compiler_params=pltpu.CompilerParams(
            dimension_semantics=("parallel",),
            vmem_limit_bytes=32 * 1024 * 1024,
        ),
    )(x_p, eps_p, w_fc, b_fc, w_heads, b_heads, w_s, b_s)

    out = packed[:B, 0 * lat_p:0 * lat_p + latent_size]
    mu = packed[:B, 1 * lat_p:1 * lat_p + latent_size]
    lv = packed[:B, 2 * lat_p:2 * lat_p + latent_size]
    return out, mu, lv


def _init_params(key, input_size, hidden_dim, latent_size):
    """Deterministic synthetic parameters (PyTorch Linear init, transposed to (in,out))."""
    ks = jax.random.split(key, 8)

    def linear(kw, kb, fan_in, fan_out):
        bound = 1.0 / jnp.sqrt(fan_in)
        w = jax.random.uniform(kw, (fan_out, fan_in), jnp.float32, -bound, bound).T
        b = jax.random.uniform(kb, (1, fan_out), jnp.float32, -bound, bound)
        return w, b

    w_fc, b_fc = linear(ks[0], ks[1], input_size, hidden_dim)
    w_mu, b_mu = linear(ks[2], ks[3], hidden_dim, latent_size)
    w_lv, b_lv = linear(ks[4], ks[5], hidden_dim, latent_size)
    w_s, b_s = linear(ks[6], ks[7], latent_size, latent_size)
    return dict(w_fc=w_fc, b_fc=b_fc, w_mu=w_mu, b_mu=b_mu,
                w_lv=w_lv, b_lv=b_lv, w_s=w_s, b_s=b_s)


def _reference(x, eps, p):
    h = x @ p["w_fc"] + p["b_fc"]
    mu = h @ p["w_mu"] + p["b_mu"]
    lv = h @ p["w_lv"] + p["b_lv"]
    z = eps * jnp.exp(0.5 * lv) + mu
    return z @ p["w_s"] + p["b_s"], mu, lv


if __name__ == "__main__":
    input_size, hidden_dim, latent_size = 32, 32, 16

    key = jax.random.PRNGKey(0)
    k_x, k_eps, k_p = jax.random.split(key, 3)
    params = _init_params(k_p, input_size, hidden_dim, latent_size)

    # --- f32 path, B = 8 (strict check) ---
    B = 8
    x = jax.random.normal(k_x, (B, input_size), jnp.float32)
    eps = jax.random.normal(k_eps, (B, latent_size), jnp.float32)

    out, mu, log_var = variational_neural_block(x, eps, params)
    jax.block_until_ready((out, mu, log_var))

    ref_out, ref_mu, ref_lv = _reference(x, eps, params)
    assert jnp.allclose(out, ref_out, atol=1e-5, rtol=1e-5)
    assert jnp.allclose(mu, ref_mu, atol=1e-5, rtol=1e-5)
    assert jnp.allclose(log_var, ref_lv, atol=1e-5, rtol=1e-5)

    # --- ragged batch (B not a multiple of the tile / sublane) ---
    B2 = 5
    x2 = jax.random.normal(jax.random.PRNGKey(1), (B2, input_size), jnp.float32)
    eps2 = jax.random.normal(jax.random.PRNGKey(2), (B2, latent_size), jnp.float32)
    out2, mu2, lv2 = variational_neural_block(x2, eps2, params)
    jax.block_until_ready((out2, mu2, lv2))
    r_out2, r_mu2, r_lv2 = _reference(x2, eps2, params)
    assert jnp.allclose(out2, r_out2, atol=1e-5, rtol=1e-5)
    assert jnp.allclose(mu2, r_mu2, atol=1e-5, rtol=1e-5)
    assert jnp.allclose(lv2, r_lv2, atol=1e-5, rtol=1e-5)

    # --- bf16-MXU path (v6e/v7x throughput mode), loose tolerance ---
    out_b, mu_b, lv_b = variational_neural_block(x, eps, params, use_bf16_matmul=True)
    jax.block_until_ready((out_b, mu_b, lv_b))
    assert jnp.all(jnp.isfinite(out_b))
    assert jnp.allclose(out_b, ref_out, atol=5e-2, rtol=5e-2)
    assert jnp.allclose(mu_b, ref_mu, atol=5e-2, rtol=5e-2)
    assert jnp.allclose(lv_b, ref_lv, atol=5e-2, rtol=5e-2)

    print("KERNEL_OK")
</pallas_src>

<mosaic_0001>
module attributes {stable_mosaic.version = 11 : i64} {
  func.func @_vnb_kernel(%arg0: i32, %arg1: memref<8x128xf32, #tpu.memory_space<vmem>>, %arg2: memref<8x128xf32, #tpu.memory_space<vmem>>, %arg3: memref<128x128xf32, #tpu.memory_space<vmem>>, %arg4: memref<1x128xf32, #tpu.memory_space<vmem>>, %arg5: memref<128x256xf32, #tpu.memory_space<vmem>>, %arg6: memref<1x256xf32, #tpu.memory_space<vmem>>, %arg7: memref<128x128xf32, #tpu.memory_space<vmem>>, %arg8: memref<1x128xf32, #tpu.memory_space<vmem>>, %arg9: memref<8x384xf32, #tpu.memory_space<vmem>>) attributes {dimension_semantics = [#tpu.dimension_semantics<parallel>], iteration_bounds = array<i64: 1>, scalar_prefetch = 0 : i64, scratch_operands = 0 : i64, tpu.core_type = #tpu.core_type<tc>, window_params = [{transform_indices = @transform_0, window_bounds = array<i64: 8, 128>}, {transform_indices = @transform_1, window_bounds = array<i64: 8, 128>}, {pipeline_mode = #tpu.pipeline_mode<synchronous>, transform_indices = @transform_2, window_bounds = array<i64: 128, 128>}, {pipeline_mode = #tpu.pipeline_mode<synchronous>, transform_indices = @transform_3, window_bounds = array<i64: 1, 128>}, {pipeline_mode = #tpu.pipeline_mode<synchronous>, transform_indices = @transform_4, window_bounds = array<i64: 128, 256>}, {pipeline_mode = #tpu.pipeline_mode<synchronous>, transform_indices = @transform_5, window_bounds = array<i64: 1, 256>}, {pipeline_mode = #tpu.pipeline_mode<synchronous>, transform_indices = @transform_6, window_bounds = array<i64: 128, 128>}, {pipeline_mode = #tpu.pipeline_mode<synchronous>, transform_indices = @transform_7, window_bounds = array<i64: 1, 128>}, {transform_indices = @transform_8, window_bounds = array<i64: 8, 384>}]} {
    %c0 = arith.constant 0 : index
    %c0_0 = arith.constant 0 : index
    %0 = vector.load %arg1[%c0, %c0_0] : memref<8x128xf32, #tpu.memory_space<vmem>>, vector<8x128xf32>
    %c0_1 = arith.constant 0 : index
    %c0_2 = arith.constant 0 : index
    %1 = vector.load %arg3[%c0_1, %c0_2] : memref<128x128xf32, #tpu.memory_space<vmem>>, vector<128x128xf32>
    %cst = arith.constant dense<0.000000e+00> : vector<8x128xf32>
    %2 = tpu.matmul %0, %1, %cst {dimension_numbers = #tpu.dot_dimension_numbers<[1], [0], [0], [1], [0, 0, 1, 1], [], []>} : vector<8x128xf32>, vector<128x128xf32>, vector<8x128xf32> -> vector<8x128xf32>
    %c0_3 = arith.constant 0 : index
    %c0_4 = arith.constant 0 : index
    %3 = vector.load %arg4[%c0_3, %c0_4] : memref<1x128xf32, #tpu.memory_space<vmem>>, vector<1x128xf32>
    %4 = vector.broadcast %3 : vector<1x128xf32> to vector<8x128xf32>
    %5 = arith.addf %2, %4 : vector<8x128xf32>
    %c0_5 = arith.constant 0 : index
    %c0_6 = arith.constant 0 : index
    %6 = vector.load %arg5[%c0_5, %c0_6] : memref<128x256xf32, #tpu.memory_space<vmem>>, vector<128x256xf32>
    %cst_7 = arith.constant dense<0.000000e+00> : vector<8x256xf32>
    %7 = tpu.matmul %5, %6, %cst_7 {dimension_numbers = #tpu.dot_dimension_numbers<[1], [0], [0], [1], [0, 0, 1, 1], [], []>} : vector<8x128xf32>, vector<128x256xf32>, vector<8x256xf32> -> vector<8x256xf32>
    %c0_8 = arith.constant 0 : index
    %c0_9 = arith.constant 0 : index
    %8 = vector.load %arg6[%c0_8, %c0_9] : memref<1x256xf32, #tpu.memory_space<vmem>>, vector<1x256xf32>
    %9 = vector.broadcast %8 : vector<1x256xf32> to vector<8x256xf32>
    %10 = arith.addf %7, %9 : vector<8x256xf32>
    %11 = vector.extract_strided_slice %10 {offsets = [0, 0], sizes = [8, 128], strides = [1, 1]} : vector<8x256xf32> to vector<8x128xf32>
    %12 = vector.extract_strided_slice %10 {offsets = [0, 128], sizes = [8, 128], strides = [1, 1]} : vector<8x256xf32> to vector<8x128xf32>
    %c0_10 = arith.constant 0 : index
    %c0_11 = arith.constant 0 : index
    %13 = vector.load %arg2[%c0_10, %c0_11] : memref<8x128xf32, #tpu.memory_space<vmem>>, vector<8x128xf32>
    %cst_12 = arith.constant 5.000000e-01 : f32
    %14 = vector.broadcast %cst_12 : f32 to vector<8x128xf32>
    %15 = arith.mulf %14, %12 : vector<8x128xf32>
    %16 = math.exp %15 : vector<8x128xf32>
    %17 = arith.mulf %13, %16 : vector<8x128xf32>
    %18 = arith.addf %17, %11 : vector<8x128xf32>
    %c0_13 = arith.constant 0 : index
    %c0_14 = arith.constant 0 : index
    %19 = vector.load %arg7[%c0_13, %c0_14] : memref<128x128xf32, #tpu.memory_space<vmem>>, vector<128x128xf32>
    %cst_15 = arith.constant dense<0.000000e+00> : vector<8x128xf32>
    %20 = tpu.matmul %18, %19, %cst_15 {dimension_numbers = #tpu.dot_dimension_numbers<[1], [0], [0], [1], [0, 0, 1, 1], [], []>} : vector<8x128xf32>, vector<128x128xf32>, vector<8x128xf32> -> vector<8x128xf32>
    %c0_16 = arith.constant 0 : index
    %c0_17 = arith.constant 0 : index
    %21 = vector.load %arg8[%c0_16, %c0_17] : memref<1x128xf32, #tpu.memory_space<vmem>>, vector<1x128xf32>
    %22 = vector.broadcast %21 : vector<1x128xf32> to vector<8x128xf32>
    %23 = arith.addf %20, %22 : vector<8x128xf32>
    %24 = tpu.concatenate %23, %11, %12 in 1 : vector<8x128xf32>, vector<8x128xf32>, vector<8x128xf32> -> vector<8x384xf32>
    %c0_18 = arith.constant 0 : index
    %c0_19 = arith.constant 0 : index
    %25 = vector.load %arg9[%c0_18, %c0_19] : memref<8x384xf32, #tpu.memory_space<vmem>>, vector<8x384xf32>
    tpu.vector_store %arg9[%c0_18, %c0_19], %24 {strides = array<i32>} : memref<8x384xf32, #tpu.memory_space<vmem>>, vector<8x384xf32>,
    return
  }
  func.func @transform_0(%arg0: i32) -> (i32, i32) {
    %c0_i32 = arith.constant 0 : i32
    %c0_i32_0 = arith.constant 0 : i32
    return %arg0, %c0_i32 : i32, i32
  }
  func.func @transform_1(%arg0: i32) -> (i32, i32) {
    %c0_i32 = arith.constant 0 : i32
    %c0_i32_0 = arith.constant 0 : i32
    return %arg0, %c0_i32 : i32, i32
  }
  func.func @transform_2(%arg0: i32) -> (i32, i32) {
    %c0_i32 = arith.constant 0 : i32
    %c0_i32_0 = arith.constant 0 : i32
    %c0_i32_1 = arith.constant 0 : i32
    return %c0_i32, %c0_i32_0 : i32, i32
  }
  func.func @transform_3(%arg0: i32) -> (i32, i32) {
    %c0_i32 = arith.constant 0 : i32
    %c0_i32_0 = arith.constant 0 : i32
    %c0_i32_1 = arith.constant 0 : i32
    return %c0_i32, %c0_i32_0 : i32, i32
  }
  func.func @transform_4(%arg0: i32) -> (i32, i32) {
    %c0_i32 = arith.constant 0 : i32
    %c0_i32_0 = arith.constant 0 : i32
    %c0_i32_1 = arith.constant 0 : i32
    return %c0_i32, %c0_i32_0 : i32, i32
  }
  func.func @transform_5(%arg0: i32) -> (i32, i32) {
    %c0_i32 = arith.constant 0 : i32
    %c0_i32_0 = arith.constant 0 : i32
    %c0_i32_1 = arith.constant 0 : i32
    return %c0_i32, %c0_i32_0 : i32, i32
  }
  func.func @transform_6(%arg0: i32) -> (i32, i32) {
    %c0_i32 = arith.constant 0 : i32
    %c0_i32_0 = arith.constant 0 : i32
    %c0_i32_1 = arith.constant 0 : i32
    return %c0_i32, %c0_i32_0 : i32, i32
  }
  func.func @transform_7(%arg0: i32) -> (i32, i32) {
    %c0_i32 = arith.constant 0 : i32
    %c0_i32_0 = arith.constant 0 : i32
    %c0_i32_1 = arith.constant 0 : i32
    return %c0_i32, %c0_i32_0 : i32, i32
  }
  func.func @transform_8(%arg0: i32) -> (i32, i32) {
    %c0_i32 = arith.constant 0 : i32
    %c0_i32_0 = arith.constant 0 : i32
    return %arg0, %c0_i32 : i32, i32
  }
}

</mosaic_0001>

<bundles_post_ra>
// kernel: variational_neural_block.1
= control target key start
LH: loop header
LB: loop body
LE: loop exit
PB: predicated region body
PF: predicated region fallthrough
CT: control target
= control target key end

     0   :  { %s466_s2 = inlined_call_operand.vmem [shape: f32[128,128], index: 2, kind: input, shape index: {}]   ;;  %s467_s4 = inlined_call_operand.vmem [shape: f32[128,256], index: 4, kind: input, shape index: {}]   ;;  %s468_s3 = inlined_call_operand.vmem [shape: f32[1,128], index: 3, kind: input, shape index: {}]   ;;  %s469_s0 = inlined_call_operand.vmem [shape: f32[8,128], index: 0, kind: input, shape index: {}]   ;;  %s470_s6 = inlined_call_operand.vmem [shape: f32[128,128], index: 6, kind: input, shape index: {}]   ;;  %s471_s7 = inlined_call_operand.vmem [shape: f32[1,128], index: 7, kind: input, shape index: {}]   ;;  %s472_s5 = inlined_call_operand.vmem [shape: f32[1,256], index: 5, kind: input, shape index: {}]   ;;  %s473_s8 = inlined_call_operand.vmem [shape: f32[8,384], index: 8, kind: output, shape index: {}]   ;;  %s474_s1 = inlined_call_operand.vmem [shape: f32[8,128], index: 1, kind: input, shape index: {}]  }
   0x1   :  { %v45_v0 = vld [vmem:[%s466_s2 + $0x78] sm:$0xff]  ;;  %v44_v1 = vld [vmem:[%s466_s2 + $0x70] sm:$0xff]  ;;  %v43_v2 = vld [vmem:[%s466_s2 + $0x68] sm:$0xff] }
   0x2   :  { %50 = vmatpush.msra.mxu0 %v45_v0  ;;  %v42_v3 = vld [vmem:[%s466_s2 + $0x60] sm:$0xff]  ;;  %v41_v4 = vld [vmem:[%s466_s2 + $0x58] sm:$0xff]  ;;  %v100_v5 = vld [vmem:[%s467_s4 + $0xf0] sm:$0xff] }
   0x3   :  { %108 = vmatpush.msra.mxu1 %v100_v5  ;;  %v101_v6 = vld [vmem:[%s467_s4 + $0xf8] sm:$0xff]  ;;  %v98_v7 = vld [vmem:[%s467_s4 + $0xe0] sm:$0xff]  ;;  %v99_v8 = vld [vmem:[%s467_s4 + $0xe8] sm:$0xff] }
   0x4   :  { %51 = vmatpush.msra.mxu0 %v44_v1  ;;  %128 = vmatpush.msra.mxu2 %v101_v6  ;;  %v96_v9 = vld [vmem:[%s467_s4 + $0xd0] sm:$0xff]  ;;  %v97_v11 = vld [vmem:[%s467_s4 + $0xd8] sm:$0xff]  ;;  %v94_v12 = vld [vmem:[%s467_s4 + $0xc0] sm:$0xff] }
   0x5   :  { %v40_v10 = vld [vmem:[%s466_s2 + $0x50] sm:$0xff]  ;;  %109 = vmatpush.msra.mxu1 %v98_v7  ;;  %v39_v13 = vld [vmem:[%s466_s2 + $0x48] sm:$0xff]  ;;  %v38_v16 = vld [vmem:[%s466_s2 + $0x40] sm:$0xff] }
   0x6   :  { %52 = vmatpush.msra.mxu0 %v43_v2  ;;  %129 = vmatpush.msra.mxu2 %v99_v8  ;;  %v95_v14 = vld [vmem:[%s467_s4 + $0xc8] sm:$0xff]  ;;  %v92_v15 = vld [vmem:[%s467_s4 + $0xb0] sm:$0xff]  ;;  %v93_v17 = vld [vmem:[%s467_s4 + $0xb8] sm:$0xff] }
   0x7   :  { %110 = vmatpush.msra.mxu1 %v96_v9  ;;  %v90_v18 = vld [vmem:[%s467_s4 + $0xa0] sm:$0xff]  ;;  %v37_v19 = vld [vmem:[%s466_s2 + $0x38] sm:$0xff]  ;;  %v91_v20 = vld [vmem:[%s467_s4 + $0xa8] sm:$0xff] }
   0x8   :  { %53 = vmatpush.msra.mxu0 %v42_v3  ;;  %130 = vmatpush.msra.mxu2 %v97_v11  ;;  %v88_v21 = vld [vmem:[%s467_s4 + $0x90] sm:$0xff]  ;;  %v89_v23 = vld [vmem:[%s467_s4 + $0x98] sm:$0xff]  ;;  %v86_v24 = vld [vmem:[%s467_s4 + $0x80] sm:$0xff] }
   0x9   :  { %111 = vmatpush.msra.mxu1 %v94_v12  ;;  %v36_v22 = vld [vmem:[%s466_s2 + $0x30] sm:$0xff]  ;;  %v35_v25 = vld [vmem:[%s466_s2 + $0x28] sm:$0xff]  ;;  %v34_v28 = vld [vmem:[%s466_s2 + $0x20] sm:$0xff] }
   0xa   :  { %54 = vmatpush.msra.mxu0 %v41_v4  ;;  %131 = vmatpush.msra.mxu2 %v95_v14  ;;  %v87_v26 = vld [vmem:[%s467_s4 + $0x88] sm:$0xff]  ;;  %v84_v27 = vld [vmem:[%s467_s4 + $0x70] sm:$0xff]  ;;  %v85_v29 = vld [vmem:[%s467_s4 + $0x78] sm:$0xff] }
   0xb   :  { %112 = vmatpush.msra.mxu1 %v92_v15  ;;  %v82_v30 = vld [vmem:[%s467_s4 + $0x60] sm:$0xff]  ;;  %v33_v31 = vld [vmem:[%s466_s2 + $0x18] sm:$0xff]  ;;  %v83_v32 = vld [vmem:[%s467_s4 + $0x68] sm:$0xff] }
   0xc   :  { %55 = vmatpush.msra.mxu0 %v40_v10  ;;  %132 = vmatpush.msra.mxu2 %v93_v17  ;;  %v80_v33 = vld [vmem:[%s467_s4 + $0x50] sm:$0xff]  ;;  %v81_v35 = vld [vmem:[%s467_s4 + $0x58] sm:$0xff]  ;;  %v78_v36 = vld [vmem:[%s467_s4 + $0x40] sm:$0xff] }
   0xd   :  { %113 = vmatpush.msra.mxu1 %v90_v18  ;;  %v32_v34 = vld [vmem:[%s466_s2 + $0x10] sm:$0xff]  ;;  %v31_v37 = vld [vmem:[%s466_s2 + $0x8] sm:$0xff]  ;;  %v30_v40 = vld [vmem:[%s466_s2] sm:$0xff] }
   0xe   :  { %56 = vmatpush.msra.mxu0 %v39_v13  ;;  %133 = vmatpush.msra.mxu2 %v91_v20  ;;  %v79_v38 = vld [vmem:[%s467_s4 + $0x48] sm:$0xff]  ;;  %v76_v39 = vld [vmem:[%s467_s4 + $0x30] sm:$0xff]  ;;  %v77_v41 = vld [vmem:[%s467_s4 + $0x38] sm:$0xff] }
   0xf   :  { %114 = vmatpush.msra.mxu1 %v88_v21  ;;  %v29_v42 = vld [vmem:[%s469_s0] sm:$0xff]  ;;  %v75_v44 = vld [vmem:[%s467_s4 + $0x28] sm:$0xff]  ;;  %v72_v45 = vld [vmem:[%s467_s4 + $0x10] sm:$0xff] }
  0x10   :  { %57 = vmatpush.msra.mxu0 %v38_v16  ;;  %134 = vmatpush.msra.mxu2 %v89_v23  ;;  %v74_v43 = vld [vmem:[%s467_s4 + $0x20] sm:$0xff]  ;;  %v73_v46 = vld [vmem:[%s467_s4 + $0x18] sm:$0xff]  ;;  %v71_v48 = vld [vmem:[%s467_s4 + $0x8] sm:$0xff] }
  0x11   :  { %115 = vmatpush.msra.mxu1 %v86_v24  ;;  %v70_v47 = vld [vmem:[%s467_s4] sm:$0xff]  ;;  %v169_v49 = vld [vmem:[%s470_s6 + $0x78] sm:$0xff]  ;;  %v168_v50 = vld [vmem:[%s470_s6 + $0x70] sm:$0xff] }
  0x12   :  { %58 = vmatpush.msra.mxu0 %v37_v19  ;;  %135 = vmatpush.msra.mxu2 %v87_v26  ;;  %v167_v51 = vld [vmem:[%s470_s6 + $0x68] sm:$0xff]  ;;  %v166_v52 = vld [vmem:[%s470_s6 + $0x60] sm:$0xff]  ;;  %v165_v56 = vld [vmem:[%s470_s6 + $0x58] sm:$0xff] }
  0x13   :  { %116 = vmatpush.msra.mxu1 %v84_v27  ;;  %174 = vmatpush.msra.mxu3 %v169_v49  ;;  %v201_v53 = vld [vmem:[%s468_s3] ss:$0 sm:$0xff]  ;;  %v164_v57 = vld [vmem:[%s470_s6 + $0x50] sm:$0xff]  ;;  %v163_v58 = vld [vmem:[%s470_s6 + $0x48] sm:$0xff] }
  0x14   :  { %59 = vmatpush.msra.mxu0 %v36_v22  ;;  %136 = vmatpush.msra.mxu2 %v85_v29  ;;  %v162_v59 = vld [vmem:[%s470_s6 + $0x40] sm:$0xff]  ;;  %v161_v60 = vld [vmem:[%s470_s6 + $0x38] sm:$0xff]  ;;  %v160_v61 = vld [vmem:[%s470_s6 + $0x30] sm:$0xff] }
  0x15   :  { %117 = vmatpush.msra.mxu1 %v82_v30  ;;  %175 = vmatpush.msra.mxu3 %v168_v50  ;;  %v159_v62 = vld [vmem:[%s470_s6 + $0x28] sm:$0xff]  ;;  %v158_v63 = vld [vmem:[%s470_s6 + $0x20] sm:$0xff]  ;;  %v157_v0 = vld [vmem:[%s470_s6 + $0x18] sm:$0xff] }
  0x16   :  { %60 = vmatpush.msra.mxu0 %v35_v25  ;;  %137 = vmatpush.msra.mxu2 %v83_v32  ;;  %v156_v1 = vld [vmem:[%s470_s6 + $0x10] sm:$0xff]  ;;  %v155_v2 = vld [vmem:[%s470_s6 + $0x8] sm:$0xff]  ;;  %v154_v3 = vld [vmem:[%s470_s6] sm:$0xff] }
  0x17   :  { %118 = vmatpush.msra.mxu1 %v80_v33  ;;  %176 = vmatpush.msra.mxu3 %v167_v51  ;;  %v102_v4 = vld [vmem:[%s472_s5] sm:$0x3] }
  0x18   :  { %61 = vmatpush.msra.mxu0 %v34_v28  ;;  %138 = vmatpush.msra.mxu2 %v81_v35  ;;  %v104_v5 = vperm.slane %v102_v4, 0  ;;  %v105_v8 = vperm.slane %v102_v4, 1  ;;  %v148_v13 = vld [vmem:[%s474_s1] sm:$0xff] }
  0x19   :  { %119 = vmatpush.msra.mxu1 %v78_v36  ;;  %177 = vmatpush.msra.mxu3 %v166_v52  ;;  %v202_v17 = vld [vmem:[%s471_s7] ss:$0 sm:$0xff] }
  0x1a   :  { %62 = vmatpush.msra.mxu0 %v33_v31  ;;  %139 = vmatpush.msra.mxu2 %v79_v38 }
  0x1b   :  { %120 = vmatpush.msra.mxu1 %v76_v39  ;;  %178 = vmatpush.msra.mxu3 %v165_v56 }
  0x1c   :  { %63 = vmatpush.msra.mxu0 %v32_v34  ;;  %140 = vmatpush.msra.mxu2 %v77_v41 }
  0x1d   :  { %121 = vmatpush.msra.mxu1 %v74_v43  ;;  %179 = vmatpush.msra.mxu3 %v164_v57 }
  0x1e   :  { %64 = vmatpush.msra.mxu0 %v31_v37  ;;  %141 = vmatpush.msra.mxu2 %v75_v44 }
  0x1f   :  { %122 = vmatpush.msra.mxu1 %v72_v45  ;;  %180 = vmatpush.msra.mxu3 %v163_v58 }
  0x20   :  { %65 = vmatpush.msra.mxu0 %v30_v40  ;;  %142 = vmatpush.msra.mxu2 %v73_v46 }
  0x21   :  { %66 = vmatmul.f32.vlgmr.msra.gmra.mxu0 %v29_v42  ;;  %123 = vmatpush.msra.mxu1 %v70_v47 }
  0x22   :  { %143 = vmatpush.msra.mxu2 %v71_v48  ;;  %181 = vmatpush.msra.mxu3 %v162_v59 }
  0x24   :  { %182 = vmatpush.msra.mxu3 %v161_v60 }
  0x26   :  { %183 = vmatpush.msra.mxu3 %v160_v61 }
  0x28   :  { %184 = vmatpush.msra.mxu3 %v159_v62 }
  0x2a   :  { %185 = vmatpush.msra.mxu3 %v158_v63 }
  0x2c   :  { %186 = vmatpush.msra.mxu3 %v157_v0 }
  0x2e   :  { %187 = vmatpush.msra.mxu3 %v156_v1 }
  0x30   :  { %188 = vmatpush.msra.mxu3 %v155_v2 }
  0x32   :  { %189 = vmatpush.msra.mxu3 %v154_v3 }
  0x9e   :  { %v67_v54 = vpop.f32.mrf.mxu0 }
  0x9f   :  { %v68_v55 = vadd.f32 %v201_v53, %v67_v54 }
  0xa1   :  { %124 = vmatmul.f32.vlgmr.msra.gmra.mxu1 %v68_v55  ;;  %144 = vmatmul.f32.vlgmr.msra.gmra.mxu2 %v68_v55 }
 0x11e   :  { %v125_v6 = vpop.f32.mrf.mxu1 }
 0x11f   :  { %v126_v7 = vadd.f32 %v125_v6, %v104_v5 }
 0x121   :  { %195 = vst [vmem:[%s473_s8 + $0x8] sm:$0xff] %v126_v7 }
 0x124   :  { %v145_v9 = vpop.f32.mrf.mxu2 }
 0x125   :  { %v146_v10 = vadd.f32 %v145_v9, %v105_v8 }
 0x127   :  { %v149_v11 = vmul.f32 0.5, %v146_v10  ;;  %196 = vst [vmem:[%s473_s8 + $0x10] sm:$0xff] %v146_v10 }
 0x129   :  { %v150_v12 = vmul.f32 1.442695, %v149_v11 }
 0x12b   :  { %203 = vpow2.f32 %v150_v12 }
 0x131   :  { %v204_v14 = vpop.eup %203 }
 0x132   :  { %v152_v15 = vmul.f32 %v204_v14, %v148_v13 }
 0x134   :  { %v153_v16 = vadd.f32 %v152_v15, %v126_v7 }
 0x136   :  { %190 = vmatmul.f32.vlgmr.msra.gmra.mxu3 %v153_v16 }
 0x1b9   :  { %v191_v18 = vpop.f32.mrf.mxu3 }
 0x1ba   :  { %v192_v19 = vadd.f32 %v202_v17, %v191_v18 }
 0x1bc   :  { %194 = vst [vmem:[%s473_s8] sm:$0xff] %v192_v19 }

</bundles_post_ra>
